<compile_context>
chip_gen: v7x
topology: tpu7x:2x2x1
jax: 0.10.0
libtpu: 0.0.40
codegen_flags: <defaults>
</compile_context>

<pallas_src>
import numpy as np
import jax
import jax.numpy as jnp
from jax.experimental import pallas as pl
from jax.experimental.pallas import tpu as pltpu


# ---------------------------------------------------------------------------
# Deterministic parameter init mirroring layer_init (orthogonal weight, const bias)
# ---------------------------------------------------------------------------
def orthogonal_(key, out_dim, in_dim, std):
    """Orthogonal init like torch.nn.init.orthogonal_ (gain=std), shape (out,in)."""
    rows, cols = out_dim, in_dim
    flat = jax.random.normal(key, (max(rows, cols), min(rows, cols)), dtype=jnp.float32)
    q, r = jnp.linalg.qr(flat)
    d = jnp.sign(jnp.diag(r))          # sign correction -> deterministic
    q = q * d[None, :]
    if rows < cols:
        q = q.T
    return (std * q[:rows, :cols]).astype(jnp.float32)


def init_params(seed=0):
    """Weights stored in 'transposed compute' layout: h = W @ x, W is (out, in)."""
    k = jax.random.PRNGKey(seed)
    k1, k2, k3 = jax.random.split(k, 3)
    std = float(np.sqrt(2.0))
    w1 = orthogonal_(k1, 64, 6, std).astype(jnp.bfloat16)      # (64, 6)  bf16 MXU input
    b1 = jnp.zeros((64, 1), jnp.float32)                        # column bias
    w2 = orthogonal_(k2, 64, 64, std).astype(jnp.bfloat16)      # (64, 64) bf16 MXU input
    b2 = jnp.zeros((64, 1), jnp.float32)
    w3 = orthogonal_(k3, 1, 64, 1.0).T                          # (64, 1)  f32 (VPU path)
    b3 = jnp.zeros((1, 1), jnp.float32)
    return w1, b1, w2, b2, w3, b3


# ---------------------------------------------------------------------------
# Pallas kernel: one batch tile of the fused 3-layer MLP (batch on the lane axis)
# ---------------------------------------------------------------------------
def mlp_kernel(x_ref, w1_ref, b1_ref, w2_ref, b2_ref, w3_ref, b3_ref, o_ref):
    xb = x_ref[...]                                                 # (6, T) bf16
    # Layer 1: (64,6) @ (6,T) on MXU, f32 accumulation; tanh/bias in f32
    h1 = jnp.tanh(
        jnp.dot(w1_ref[...], xb, preferred_element_type=jnp.float32) + b1_ref[...]
    )                                                               # (64, T) f32
    # Layer 2: (64,64) @ (64,T); re-feed MXU in bf16
    h2 = jnp.tanh(
        jnp.dot(w2_ref[...], h1.astype(jnp.bfloat16),
                preferred_element_type=jnp.float32) + b2_ref[...]
    )                                                               # (64, T) f32
    # Layer 3: 64 -> 1 as VPU multiply + cross-sublane reduction (skip N=1 MXU matmul)
    out = jnp.sum(h2 * w3_ref[...], axis=0, keepdims=True) + b3_ref[...]   # (1, T)
    o_ref[...] = out.astype(o_ref.dtype)


def nne_forward(x, params, tile_b=1024):
    """x: (B, 6) float32 -> (B, 1) float32."""
    w1, b1, w2, b2, w3, b3 = params
    B, F = x.shape

    # Lane-dense batch tile: multiple of 128, but don't over-pad tiny batches.
    tile_b = min(tile_b, max(128, ((B + 127) // 128) * 128))
    n_tiles = pl.cdiv(B, tile_b)
    B_pad = n_tiles * tile_b

    # Transpose so batch is the lane (last) dim; pad tail tile; bf16 for the MXU.
    x_t = jnp.zeros((F, B_pad), jnp.bfloat16).at[:, :B].set(x.T.astype(jnp.bfloat16))

    const = lambda arr: pl.BlockSpec(arr.shape, lambda i: (0, 0))   # VMEM-resident params

    out = pl.pallas_call(
        mlp_kernel,
        out_shape=jax.ShapeDtypeStruct((1, B_pad), jnp.float32),
        grid=(n_tiles,),
        in_specs=[
            pl.BlockSpec((F, tile_b), lambda i: (0, i)),            # x tile
            const(w1), const(b1), const(w2), const(b2), const(w3), const(b3),
        ],
        out_specs=pl.BlockSpec((1, tile_b), lambda i: (0, i)),      # lane-dense output
        compiler_params=pltpu.CompilerParams(
            dimension_semantics=("parallel",),
        ),
    )(x_t, w1, b1, w2, b2, w3, b3)

    return out[:, :B].T                                             # (B, 1)


# ---------------------------------------------------------------------------
# Pure-JAX reference mirroring the kernel's bf16-input / f32-accumulate math
# ---------------------------------------------------------------------------
def nne_ref(x, params):
    w1, b1, w2, b2, w3, b3 = params
    w1f = w1.astype(jnp.float32)                     # (64, 6)
    w2f = w2.astype(jnp.float32)                     # (64, 64)
    xb = x.astype(jnp.bfloat16).astype(jnp.float32)  # (B, 6)
    h1 = jnp.tanh(xb @ w1f.T + b1.T)                 # (B, 64)
    h1b = h1.astype(jnp.bfloat16).astype(jnp.float32)
    h2 = jnp.tanh(h1b @ w2f.T + b2.T)                # (B, 64)
    return h2 @ w3 + b3.T                            # (B, 1)


if __name__ == "__main__":
    key = jax.random.PRNGKey(0)
    B = 8
    x = jax.random.normal(key, (B, 6), dtype=jnp.float32)

    params = init_params(seed=0)

    out = nne_forward(x, params)
    out = jax.block_until_ready(out)

    ref = nne_ref(x, params)
    np.testing.assert_allclose(np.asarray(out), np.asarray(ref), rtol=1e-3, atol=1e-3)
    assert out.shape == (B, 1)

    print("KERNEL_OK")
</pallas_src>

<mosaic_0001>
module attributes {stable_mosaic.version = 11 : i64} {
  func.func @mlp_kernel(%arg0: i32, %arg1: memref<6x128xbf16, #tpu.memory_space<vmem>>, %arg2: memref<64x6xbf16, #tpu.memory_space<vmem>>, %arg3: memref<64x1xf32, #tpu.memory_space<vmem>>, %arg4: memref<64x64xbf16, #tpu.memory_space<vmem>>, %arg5: memref<64x1xf32, #tpu.memory_space<vmem>>, %arg6: memref<64x1xf32, #tpu.memory_space<vmem>>, %arg7: memref<1x1xf32, #tpu.memory_space<vmem>>, %arg8: memref<1x128xf32, #tpu.memory_space<vmem>>) attributes {dimension_semantics = [#tpu.dimension_semantics<parallel>], iteration_bounds = array<i64: 1>, scalar_prefetch = 0 : i64, scratch_operands = 0 : i64, tpu.core_type = #tpu.core_type<tc>, window_params = [{transform_indices = @transform_0, window_bounds = array<i64: 6, 128>}, {pipeline_mode = #tpu.pipeline_mode<synchronous>, transform_indices = @transform_1, window_bounds = array<i64: 64, 6>}, {pipeline_mode = #tpu.pipeline_mode<synchronous>, transform_indices = @transform_2, window_bounds = array<i64: 64, 1>}, {pipeline_mode = #tpu.pipeline_mode<synchronous>, transform_indices = @transform_3, window_bounds = array<i64: 64, 64>}, {pipeline_mode = #tpu.pipeline_mode<synchronous>, transform_indices = @transform_4, window_bounds = array<i64: 64, 1>}, {pipeline_mode = #tpu.pipeline_mode<synchronous>, transform_indices = @transform_5, window_bounds = array<i64: 64, 1>}, {pipeline_mode = #tpu.pipeline_mode<synchronous>, transform_indices = @transform_6, window_bounds = array<i64: 1, 1>}, {transform_indices = @transform_7, window_bounds = array<i64: 1, 128>}]} {
    %c0 = arith.constant 0 : index
    %c0_0 = arith.constant 0 : index
    %0 = vector.load %arg1[%c0, %c0_0] : memref<6x128xbf16, #tpu.memory_space<vmem>>, vector<6x128xbf16>
    %c0_1 = arith.constant 0 : index
    %c0_2 = arith.constant 0 : index
    %1 = vector.load %arg2[%c0_1, %c0_2] : memref<64x6xbf16, #tpu.memory_space<vmem>>, vector<64x6xbf16>
    %cst = arith.constant dense<0.000000e+00> : vector<64x128xf32>
    %2 = tpu.matmul %1, %0, %cst {dimension_numbers = #tpu.dot_dimension_numbers<[1], [0], [0], [1], [0, 0, 1, 1], [], []>} : vector<64x6xbf16>, vector<6x128xbf16>, vector<64x128xf32> -> vector<64x128xf32>
    %c0_3 = arith.constant 0 : index
    %c0_4 = arith.constant 0 : index
    %3 = vector.load %arg3[%c0_3, %c0_4] : memref<64x1xf32, #tpu.memory_space<vmem>>, vector<64x1xf32>
    %4 = vector.broadcast %3 : vector<64x1xf32> to vector<64x128xf32>
    %5 = arith.addf %2, %4 : vector<64x128xf32>
    %6 = math.tanh %5 : vector<64x128xf32>
    %c0_5 = arith.constant 0 : index
    %c0_6 = arith.constant 0 : index
    %7 = vector.load %arg4[%c0_5, %c0_6] : memref<64x64xbf16, #tpu.memory_space<vmem>>, vector<64x64xbf16>
    %8 = arith.truncf %6 : vector<64x128xf32> to vector<64x128xbf16>
    %cst_7 = arith.constant dense<0.000000e+00> : vector<64x128xf32>
    %9 = tpu.matmul %7, %8, %cst_7 {dimension_numbers = #tpu.dot_dimension_numbers<[1], [0], [0], [1], [0, 0, 1, 1], [], []>} : vector<64x64xbf16>, vector<64x128xbf16>, vector<64x128xf32> -> vector<64x128xf32>
    %c0_8 = arith.constant 0 : index
    %c0_9 = arith.constant 0 : index
    %10 = vector.load %arg5[%c0_8, %c0_9] : memref<64x1xf32, #tpu.memory_space<vmem>>, vector<64x1xf32>
    %11 = vector.broadcast %10 : vector<64x1xf32> to vector<64x128xf32>
    %12 = arith.addf %9, %11 : vector<64x128xf32>
    %13 = math.tanh %12 : vector<64x128xf32>
    %c0_10 = arith.constant 0 : index
    %c0_11 = arith.constant 0 : index
    %14 = vector.load %arg6[%c0_10, %c0_11] : memref<64x1xf32, #tpu.memory_space<vmem>>, vector<64x1xf32>
    %15 = vector.broadcast %14 : vector<64x1xf32> to vector<64x128xf32>
    %16 = arith.mulf %13, %15 : vector<64x128xf32>
    %cst_12 = arith.constant dense<0.000000e+00> : vector<128xf32>
    %17 = vector.multi_reduction <add>, %16, %cst_12 [0] : vector<64x128xf32> to vector<128xf32>
    %18 = vector.shape_cast %17 : vector<128xf32> to vector<1x128xf32>
    %c0_13 = arith.constant 0 : index
    %c0_14 = arith.constant 0 : index
    %19 = vector.load %arg7[%c0_13, %c0_14] : memref<1x1xf32, #tpu.memory_space<vmem>>, vector<1x1xf32>
    %20 = vector.broadcast %19 : vector<1x1xf32> to vector<1x128xf32>
    %21 = arith.addf %18, %20 : vector<1x128xf32>
    %c0_15 = arith.constant 0 : index
    %c0_16 = arith.constant 0 : index
    %22 = vector.load %arg8[%c0_15, %c0_16] : memref<1x128xf32, #tpu.memory_space<vmem>>, vector<1x128xf32>
    tpu.vector_store %arg8[%c0_15, %c0_16], %21 {strides = array<i32>} : memref<1x128xf32, #tpu.memory_space<vmem>>, vector<1x128xf32>,
    return
  }
  func.func @transform_0(%arg0: i32) -> (i32, i32) {
    %c0_i32 = arith.constant 0 : i32
    %c0_i32_0 = arith.constant 0 : i32
    return %c0_i32, %arg0 : i32, i32
  }
  func.func @transform_1(%arg0: i32) -> (i32, i32) {
    %c0_i32 = arith.constant 0 : i32
    %c0_i32_0 = arith.constant 0 : i32
    %c0_i32_1 = arith.constant 0 : i32
    return %c0_i32, %c0_i32_0 : i32, i32
  }
  func.func @transform_2(%arg0: i32) -> (i32, i32) {
    %c0_i32 = arith.constant 0 : i32
    %c0_i32_0 = arith.constant 0 : i32
    %c0_i32_1 = arith.constant 0 : i32
    return %c0_i32, %c0_i32_0 : i32, i32
  }
  func.func @transform_3(%arg0: i32) -> (i32, i32) {
    %c0_i32 = arith.constant 0 : i32
    %c0_i32_0 = arith.constant 0 : i32
    %c0_i32_1 = arith.constant 0 : i32
    return %c0_i32, %c0_i32_0 : i32, i32
  }
  func.func @transform_4(%arg0: i32) -> (i32, i32) {
    %c0_i32 = arith.constant 0 : i32
    %c0_i32_0 = arith.constant 0 : i32
    %c0_i32_1 = arith.constant 0 : i32
    return %c0_i32, %c0_i32_0 : i32, i32
  }
  func.func @transform_5(%arg0: i32) -> (i32, i32) {
    %c0_i32 = arith.constant 0 : i32
    %c0_i32_0 = arith.constant 0 : i32
    %c0_i32_1 = arith.constant 0 : i32
    return %c0_i32, %c0_i32_0 : i32, i32
  }
  func.func @transform_6(%arg0: i32) -> (i32, i32) {
    %c0_i32 = arith.constant 0 : i32
    %c0_i32_0 = arith.constant 0 : i32
    %c0_i32_1 = arith.constant 0 : i32
    return %c0_i32, %c0_i32_0 : i32, i32
  }
  func.func @transform_7(%arg0: i32) -> (i32, i32) {
    %c0_i32 = arith.constant 0 : i32
    %c0_i32_0 = arith.constant 0 : i32
    return %c0_i32, %arg0 : i32, i32
  }
}

</mosaic_0001>

<bundles_post_ra>
// kernel: tpu_custom_call.1
= control target key start
LH: loop header
LB: loop body
LE: loop exit
PB: predicated region body
PF: predicated region fallthrough
CT: control target
= control target key end

     0   :  { %s754_s0 = inlined_call_operand.vmem [shape: bf16[6,128], index: 0, kind: input, shape index: {}]   ;;  %s755_s1 = inlined_call_operand.vmem [shape: bf16[64,6], index: 1, kind: input, shape index: {}]   ;;  %s756_s2 = inlined_call_operand.vmem [shape: f32[64,1], index: 2, kind: input, shape index: {}]   ;;  %s757_s3 = inlined_call_operand.vmem [shape: bf16[64,64], index: 3, kind: input, shape index: {}]   ;;  %s758_s4 = inlined_call_operand.vmem [shape: f32[64,1], index: 4, kind: input, shape index: {}]   ;;  %s759_s5 = inlined_call_operand.vmem [shape: f32[64,1], index: 5, kind: input, shape index: {}]   ;;  %s760_s6 = inlined_call_operand.<no memory space> [shape: f32[1,1], index: 6, kind: input, shape index: {}]   ;;  %s761_s7 = inlined_call_operand.hbm [shape: f32[1,128], index: 7, kind: output, shape index: {}]  }
   0x1   :  { %v12_v0 = vstv %s760_s6 }
   0x2   :  { %13 = vst [vmem:[#allocation2] sm:$0x1] %v12_v0 }
   0x3   :  { %v30_v1 = vld [vmem:[%s754_s0] sm:$0x7]  ;;  %vm120_vm0 = vcmask 1042432   ;;  %vm107_vm1 = vcmask 48128   ;;  %v527_v4 = vld [vmem:[%s755_s1 + $0x8] sm:$0xff]   ;;  %v528_v5 = vld [vmem:[%s755_s1 + $0x10] sm:$0xff]  }
   0x4   :  { %v526_v2 = vld [vmem:[%s755_s1] sm:$0xff]   ;;  %521 = vmatprep.subr.msk.bf16.mxu0 %vm120_vm0, %v30_v1  ;;  %v122_v3 = vsel %vm120_vm0, %v30_v1, 0  ;;  %v590_v6 = vmov 0   ;;  %v41_v8 = vld [vmem:[%s756_s2 + $0x10] sm:$0xff]  ;;  %v40_v9 = vld [vmem:[%s756_s2 + $0x8] sm:$0xff] }
   0x5   :  { %488 = vmatpush3.bf16.msra.mxu0 %v122_v3  ;;  %489 = vmatprep.mubr.msk.bf16.mxu0 %vm107_vm1, %v526_v2  ;;  %v39_v7 = vld [vmem:[%s756_s2] sm:$0xff]  ;;  %v42_v10 = vld [vmem:[%s756_s2 + $0x18] sm:$0xff]  ;;  %v44_v13 = vld [vmem:[%s756_s2 + $0x28] sm:$0xff] }
   0x6   :  { %524 = vset.pattern.permute.xlu0 %v590_v6  ;;  %525 = vset.pattern.permute.xlu1 %v590_v6  ;;  %v529_v11 = vld [vmem:[%s755_s1 + $0x18] sm:$0xff]   ;;  %v43_v12 = vld [vmem:[%s756_s2 + $0x20] sm:$0xff]  ;;  %v45_v14 = vld [vmem:[%s756_s2 + $0x30] sm:$0xff] }
   0x7   :  { %49 = vperm.xlu0 %524, %v39_v7   ;;  %59 = vperm.xlu1 %525, %v41_v8   ;;  %v46_v15 = vld [vmem:[%s756_s2 + $0x38] sm:$0xff] }
   0x8   :  { %490 = vmatmul.mubr.msk.bf16.vlgmr.msra.gmra.mrb[0].mxu0 %vm107_vm1, %v527_v4 }
   0x9   :  { %493 = vmatprep.mubr.msk.bf16.mxu0 %vm107_vm1, %v528_v5 }
   0xb   :  { %54 = vperm.xlu0 %524, %v40_v9   ;;  %64 = vperm.xlu1 %525, %v42_v10  }
   0xf   :  { %69 = vperm.xlu0 %524, %v43_v12   ;;  %74 = vperm.xlu1 %525, %v44_v13  }
  0x10   :  { %494 = vmatmul.mubr.msk.bf16.gmra.mrb[4].mxu0 %vm107_vm1, %v529_v11 }
  0x11   :  { %14 = vsyncpa [#allocation4], 0  ;;  %v209_v16 = vld [vmem:[%s758_s4] sm:$0xff]  ;;  %v210_v17 = vld [vmem:[%s758_s4 + $0x8] sm:$0xff]  ;;  %vm277_vm2 = vcmask 523264  }
  0x12   :  { %v211_v18 = vld [vmem:[%s758_s4 + $0x10] sm:$0xff]  ;;  %v212_v19 = vld [vmem:[%s758_s4 + $0x18] sm:$0xff]  ;;  %v213_v20 = vld [vmem:[%s758_s4 + $0x20] sm:$0xff] }
  0x13   :  { %79 = vperm.xlu0 %524, %v45_v14   ;;  %84 = vperm.xlu1 %525, %v46_v15   ;;  %v214_v21 = vld [vmem:[%s758_s4 + $0x28] sm:$0xff]  ;;  %v215_v22 = vld [vmem:[%s758_s4 + $0x30] sm:$0xff]  ;;  %v216_v23 = vld [vmem:[%s758_s4 + $0x38] sm:$0xff] }
  0x14   :  { %v363_v24 = vld [vmem:[%s759_s5] sm:$0xff]  ;;  %v364_v25 = vld [vmem:[%s759_s5 + $0x8] sm:$0xff]  ;;  %v365_v26 = vld [vmem:[%s759_s5 + $0x10] sm:$0xff] }
  0x15   :  { %v366_v27 = vld [vmem:[%s759_s5 + $0x18] sm:$0xff]  ;;  %v367_v28 = vld [vmem:[%s759_s5 + $0x20] sm:$0xff]  ;;  %v368_v29 = vld [vmem:[%s759_s5 + $0x28] sm:$0xff] }
  0x16   :  { %v369_v30 = vld [vmem:[%s759_s5 + $0x30] sm:$0xff]  ;;  %v370_v31 = vld [vmem:[%s759_s5 + $0x38] sm:$0xff]  ;;  %v432_v32 = vld [vmem:[#allocation2] sm:$0x1] }
  0x17   :  { %219 = vperm.xlu0 %524, %v209_v16   ;;  %224 = vperm.xlu1 %525, %v210_v17   ;;  %v530_v33 = vld [vmem:[%s757_s3] sm:$0xff]   ;;  %v531_v34 = vld [vmem:[%s757_s3 + $0x10] sm:$0xff]   ;;  %v532_v7 = vld [vmem:[%s757_s3 + $0x8] sm:$0xff]  }
  0x18   :  { %505 = vmatprep.mubr.msk.bf16.mxu0 %vm277_vm2, %v530_v33  ;;  %509 = vmatprep.mubr.msk.bf16.mxu1 %vm277_vm2, %v531_v34  ;;  %v533_v8 = vld [vmem:[%s757_s3 + $0x18] sm:$0xff]   ;;  %s591_s3 = smov [#allocation3]  }
  0x19   :  { %s450_s11 = sshll.u32 %s591_s3, 4  ;;  %s451_s11 = int_to_ptr.vmem [resolvable:$true] %s450_s11 }
  0x1a   :  { %s566_s12 = scalar_lea.vmem %s451_s11, 16  ;;  %s570_s13 = scalar_lea.vmem %s451_s11, 32 }
  0x1b   :  { %229 = vperm.xlu0 %524, %v211_v18   ;;  %234 = vperm.xlu1 %525, %v212_v19   ;;  %p567_p0 = scmp.ne.s32.totalorder %s451_s11, %s566_s12  ;;  %p571_p1 = scmp.lt.s32.totalorder %s451_s11, %s451_s11 }
  0x1c   :  { %p572_p2 = scmp.lt.s32.totalorder %s570_s13, %s566_s12 }
  0x1e   :  { %p573_p3 = por %p572_p2, %p571_p1 }
  0x1f   :  { %239 = vperm.xlu0 %524, %v213_v20   ;;  %244 = vperm.xlu1 %525, %v214_v21  }
  0x20   :  { %p574_p4 = pnand %p573_p3, %p567_p0 }
  0x23   :  { %249 = vperm.xlu0 %524, %v215_v22   ;;  %254 = vperm.xlu1 %525, %v216_v23  }
  0x27   :  { %373 = vperm.xlu0 %524, %v363_v24   ;;  %378 = vperm.xlu1 %525, %v364_v25  }
  0x2b   :  { %383 = vperm.xlu0 %524, %v365_v26   ;;  %388 = vperm.xlu1 %525, %v366_v27  }
  0x2f   :  { %393 = vperm.xlu0 %524, %v367_v28   ;;  %398 = vperm.xlu1 %525, %v368_v29  }
  0x33   :  { %403 = vperm.xlu0 %524, %v369_v30   ;;  %408 = vperm.xlu1 %525, %v370_v31  }
  0x37   :  { %435 = vperm.xlu0 %524, %v432_v32  }
  0x86   :  { %v50_v35 = vpop.permute.xlu0 %49  ;;  %v60_v36 = vpop.permute.xlu1 %59 }
  0x8a   :  { %v55_v37 = vpop.permute.xlu0 %54  ;;  %v65_v38 = vpop.permute.xlu1 %64 }
  0x8e   :  { %v70_v42 = vpop.permute.xlu0 %69  ;;  %v75_v47 = vpop.permute.xlu1 %74 }
  0x92   :  { %v80_v49 = vpop.permute.xlu0 %79  ;;  %v85_v53 = vpop.permute.xlu1 %84 }
  0x96   :  { %v220_v9 = vpop.permute.xlu0 %219  ;;  %v225_v10 = vpop.permute.xlu1 %224 }
  0x9a   :  { %v230_v11 = vpop.permute.xlu0 %229  ;;  %v235_v12 = vpop.permute.xlu1 %234 }
  0x9e   :  { %v240_v13 = vpop.permute.xlu0 %239  ;;  %v245_v14 = vpop.permute.xlu1 %244 }
  0xa2   :  { %v250_v25 = vpop.permute.xlu0 %249  ;;  %v255_v27 = vpop.permute.xlu1 %254 }
  0xa6   :  { %v374_v30 = vpop.permute.xlu0 %373  ;;  %v379_v32 = vpop.permute.xlu1 %378 }
  0xdb   :  { %v491_v39 = vpop.f32.mrb[0].mxu0 }
  0xdc   :  { %v167_v40 = vadd.f32 %v491_v39, %v60_v36  ;;  %v158_v41 = vpop.f32.mrb[1].mxu0  ;;  %v384_v36 = vpop.permute.xlu0 %383 }
  0xdd   :  { %v159_v43 = vadd.f32 %v158_v41, %v50_v35  ;;  %v492_v44 = vpop.f32.mrb[2].mxu0  ;;  %v389_v39 = vpop.permute.xlu1 %388 }
  0xde   :  { %534 = vtanh.f32 %v167_v40  ;;  %v170_v45 = vadd.f32 %v492_v44, %v65_v38  ;;  %v161_v46 = vpop.f32.mrb[3].mxu0 }
  0xdf   :  { %536 = vtanh.f32 %v159_v43  ;;  %v162_v48 = vadd.f32 %v161_v46, %v55_v37 }
  0xe0   :  { %538 = vtanh.f32 %v170_v45  ;;  %v394_v46 = vpop.permute.xlu0 %393 }
  0xe1   :  { %540 = vtanh.f32 %v162_v48 }
  0xe3   :  { %v495_v50 = vpop.f32.mrb[4].mxu0 }
  0xe4   :  { %v183_v51 = vadd.f32 %v495_v50, %v80_v49  ;;  %v174_v52 = vpop.f32.mrb[5].mxu0  ;;  %v399_v50 = vpop.permute.xlu1 %398 }
  0xe5   :  { %v175_v54 = vadd.f32 %v174_v52, %v70_v42  ;;  %v496_v55 = vpop.f32.mrb[6].mxu0 }
  0xe6   :  { %542 = vtanh.f32 %v183_v51  ;;  %v186_v56 = vadd.f32 %v496_v55, %v85_v53  ;;  %v177_v57 = vpop.f32.mrb[7].mxu0 }
  0xe7   :  { %544 = vtanh.f32 %v175_v54  ;;  %v178_v58 = vadd.f32 %v177_v57, %v75_v47  ;;  %v404_v57 = vpop.permute.xlu0 %403 }
  0xe8   :  { %v535_v59 = vpop.eup %534  ;;  %546 = vtanh.f32 %v186_v56 }
  0xe9   :  { %v537_v60 = vpop.eup %536  ;;  %548 = vtanh.f32 %v178_v58 }
  0xea   :  { %v539_v61 = vpop.eup %538 }
  0xeb   :  { %v541_v62 = vpop.eup %540  ;;  %v206_v63 = vpack.c.bf16 %v539_v61, %v535_v59 }
  0xec   :  { %v205_v0 = vpack.c.bf16 %v541_v62, %v537_v60  ;;  %v409_v60 = vpop.permute.xlu1 %408 }
  0xee   :  { %497 = vmatprep.subr.bf16.mxu0 %v205_v0  ;;  %513 = vmatprep.subr.bf16.mxu1 %v205_v0 }
  0xef   :  { %498 = vmatpush3.bf16.msra.mxu0 %v205_v0  ;;  %517 = vmatpush3.bf16.msra.mxu1 %v205_v0 }
  0xf0   :  { %v543_v1 = vpop.eup %542  ;;  %499 = vmatprep.subr.bf16.mxu0 %v206_v63  ;;  %514 = vmatprep.subr.bf16.mxu1 %v206_v63 }
  0xf1   :  { %v545_v2 = vpop.eup %544 }
  0xf2   :  { %v547_v3 = vpop.eup %546 }
  0xf3   :  { %v549_v4 = vpop.eup %548  ;;  %500 = vmatpush3.bf16.msra.mxu0 %v206_v63  ;;  %518 = vmatpush3.bf16.msra.mxu1 %v206_v63  ;;  %v208_v5 = vpack.c.bf16 %v547_v3, %v543_v1  ;;  %v438_v63 = vlaneseq }
  0xf4   :  { %v207_v6 = vpack.c.bf16 %v549_v4, %v545_v2 }
  0xf5   :  { %v439_v2 = vshrl.u32 %v438_v63, 7 }
  0xf6   :  { %501 = vmatprep.subr.bf16.mxu0 %v207_v6  ;;  %515 = vmatprep.subr.bf16.mxu1 %v207_v6 }
  0xf7   :  { %502 = vmatpush3.bf16.msra.mxu0 %v207_v6  ;;  %519 = vmatpush3.bf16.msra.mxu1 %v207_v6 }
  0xf8   :  { %503 = vmatprep.subr.bf16.mxu0 %v208_v5  ;;  %516 = vmatprep.subr.bf16.mxu1 %v208_v5 }
  0xfb   :  { %504 = vmatpush3.bf16.msra.mxu0 %v208_v5  ;;  %520 = vmatpush3.bf16.msra.mxu1 %v208_v5  ;;  %v440_v5 = vsub.s32 0, %v439_v2 }
  0xfe   :  { %506 = vmatmul.mubr.msk.bf16.vlgmr.msra.gmra.mrb[8].mxu0 %vm277_vm2, %v532_v7  ;;  %510 = vmatmul.mubr.msk.bf16.vlgmr.msra.gmra.mrb[0].mxu1 %vm277_vm2, %v533_v8  ;;  %v436_v7 = vpop.permute.xlu0 %435 }
 0x1d1   :  { %v507_v15 = vpop.f32.mrb[8].mxu0  ;;  %v511_v16 = vpop.f32.mrb[0].mxu1 }
 0x1d2   :  { %v324_v17 = vpop.f32.mrb[9].mxu0  ;;  %v340_v18 = vpop.f32.mrb[1].mxu1  ;;  %v333_v24 = vadd.f32 %v507_v15, %v230_v11  ;;  %v349_v33 = vadd.f32 %v511_v16, %v250_v25 }
 0x1d3   :  { %v508_v19 = vpop.f32.mrb[10].mxu0  ;;  %v512_v20 = vpop.f32.mrb[2].mxu1  ;;  %v325_v21 = vadd.f32 %v324_v17, %v220_v9  ;;  %v341_v29 = vadd.f32 %v340_v18, %v240_v13  ;;  %v441_v9 = vrot.slane %v436_v7, %v440_v5 }
 0x1d4   :  { %v327_v22 = vpop.f32.mrb[11].mxu0  ;;  %v343_v23 = vpop.f32.mrb[3].mxu1  ;;  %v336_v28 = vadd.f32 %v508_v19, %v235_v12  ;;  %v352_v34 = vadd.f32 %v512_v20, %v255_v27 }
 0x1d5   :  { %v328_v26 = vadd.f32 %v327_v22, %v225_v10  ;;  %550 = vtanh.f32 %v325_v21  ;;  %v344_v31 = vadd.f32 %v343_v23, %v245_v14 }
 0x1d6   :  { %552 = vtanh.f32 %v333_v24 }
 0x1d7   :  { %554 = vtanh.f32 %v328_v26 }
 0x1d8   :  { %556 = vtanh.f32 %v336_v28 }
 0x1d9   :  { %558 = vtanh.f32 %v341_v29 }
 0x1da   :  { %560 = vtanh.f32 %v344_v31 }
 0x1db   :  { %562 = vtanh.f32 %v349_v33 }
 0x1dc   :  { %564 = vtanh.f32 %v352_v34 }
 0x1df   :  { %v551_v35 = vpop.eup %550 }
 0x1e0   :  { %v553_v37 = vpop.eup %552  ;;  %v411_v40 = vmul.f32 %v551_v35, %v374_v30 }
 0x1e1   :  { %v555_v38 = vpop.eup %554  ;;  %v413_v43 = vmul.f32 %v553_v37, %v384_v36 }
 0x1e2   :  { %v412_v41 = vmul.f32 %v555_v38, %v379_v32  ;;  %v557_v42 = vpop.eup %556 }
 0x1e3   :  { %v559_v45 = vpop.eup %558  ;;  %v414_v47 = vmul.f32 %v557_v42, %v389_v39 }
 0x1e4   :  { %v419_v44 = vadd.f32 %v412_v41, %v411_v40  ;;  %v561_v49 = vpop.eup %560  ;;  %v415_v51 = vmul.f32 %v559_v45, %v394_v46 }
 0x1e5   :  { %v563_v53 = vpop.eup %562  ;;  %v416_v54 = vmul.f32 %v561_v49, %v399_v50 }
 0x1e6   :  { %v420_v48 = vadd.f32 %v419_v44, %v413_v43  ;;  %v565_v56 = vpop.eup %564  ;;  %v417_v58 = vmul.f32 %v563_v53, %v404_v57 }
 0x1e7   :  { %v418_v61 = vmul.f32 %v565_v56, %v409_v60 }
 0x1e8   :  { %v421_v52 = vadd.f32 %v420_v48, %v414_v47 }
 0x1ea   :  { %v422_v55 = vadd.f32 %v421_v52, %v415_v51 }
 0x1ec   :  { %v423_v59 = vadd.f32 %v422_v55, %v416_v54 }
 0x1ee   :  { %v424_v62 = vadd.f32 %v423_v59, %v417_v58 }
 0x1f0   :  { %v425_v0 = vadd.f32 %v424_v62, %v418_v61 }
 0x1f2   :  { %v426_v1 = vrot.slane %v425_v0, 4 }
 0x1f4   :  { %v427_v3 = vadd.f32 %v426_v1, %v425_v0 }
 0x1f6   :  { %v428_v4 = vrot.slane %v427_v3, 2 }
 0x1f8   :  { %v429_v6 = vadd.f32 %v428_v4, %v427_v3 }
 0x1fa   :  { %v430_v8 = vrot.slane %v429_v6, 1 }
 0x1fc   :  { %v431_v10 = vadd.f32 %v430_v8, %v429_v6 }
 0x1fe   :  { %v442_v11 = vadd.f32 %v441_v9, %v431_v10 }
 0x200   :  { %443 = vst [vmem:[#allocation3] sm:$0x1] %v442_v11 }
 0x201   :  { %577 = shalt.err (!%p574_p4)
}
 0x202   :  { %s578_s16 = scalar_lea.hbm %s761_s7, 16 }
 0x203   :  { %p579_p5 = scmp.ne.s32.totalorder %s761_s7, %s578_s16  ;;  %p582_p6 = scmp.lt.u32.totalorder %s578_s16, %s761_s7 }
 0x205   :  { %p584_p7 = pnand %p582_p6, %p579_p5 }
 0x207   :  { %587 = shalt.err (!%p584_p7)
}
 0x208   :  { %453 = dma.vmem_to_hbm [thread:$0]  %s451_s11, 16, %s761_s7, [#allocation4]  }
 0x209   :  { %588 = dma.done.wait [#allocation4], 16  }
 0x20a   :  { %589 = vsyncadd [#allocation4], 4294967280 }
 0x20b   :  { %457 = vsyncpa [#allocation4], 1 }

</bundles_post_ra>
